<compile_context>
chip_gen: v6e
topology: v6e:2x2x1
jax: 0.10.0
libtpu: 0.0.40
codegen_flags: <defaults>
</compile_context>

<pallas_src>
import functools
import warnings

import jax
import jax.numpy as jnp
from jax import lax
from jax.experimental import pallas as pl
from jax.experimental.pallas import tpu as pltpu


def _round_up(n, m):
    return ((n + m - 1) // m) * m


# --------------------------------------------------------------------------- #
# One-time hardware / capability queries.
# --------------------------------------------------------------------------- #

@functools.lru_cache(maxsize=1)
def _vmem_capacity_bytes():
    """Physical VMEM per TensorCore (128 MiB on v5e/v6e, 64 MiB on v7x)."""
    try:
        cap = int(pltpu.get_tpu_info().vmem_capacity_bytes)
        if cap > 0:
            return cap
    except Exception:
        pass
    return 64 * 1024 * 1024  # conservative fallback (v7x per-TC size)


@functools.lru_cache(maxsize=1)
def _single_buffered_supported():
    """One-time probe: can grid-constant blocks be single-buffered (pl.Buffered(1))?

    The probe mirrors the real usage below (constant index_map, 2-D and 3-D blocks,
    >1 grid step) so a success here means the real kernels will lower as well.
    Logs (warns) once and falls back to default double-buffering otherwise.
    """
    if not hasattr(pl, "Buffered"):
        warnings.warn("pl.Buffered unavailable; resident weights will be double-buffered.")
        return False
    try:
        def _probe(x_ref, w2_ref, w3_ref, o_ref):
            o_ref[...] = x_ref[...] + w2_ref[...] + w3_ref[0]

        y = pl.pallas_call(
            _probe,
            out_shape=jax.ShapeDtypeStruct((16, 128), jnp.float32),
            grid=(2,),
            in_specs=[
                pl.BlockSpec((8, 128), lambda i: (i, 0)),
                pl.BlockSpec((8, 128), lambda i: (0, 0), pipeline_mode=pl.Buffered(1)),
                pl.BlockSpec((2, 8, 128), lambda i: (0, 0, 0),
                             pipeline_mode=pl.Buffered(1)),
            ],
            out_specs=pl.BlockSpec((8, 128), lambda i: (i, 0)),
        )(jnp.zeros((16, 128), jnp.float32),
          jnp.zeros((8, 128), jnp.float32),
          jnp.zeros((2, 8, 128), jnp.float32))
        jax.block_until_ready(y)
        return True
    except Exception:
        warnings.warn("pl.Buffered(1) not supported by this Pallas/Mosaic version; "
                      "falling back to default double-buffered resident weights.")
        return False


def _resident_spec(shape):
    """VMEM-resident block (constant across the batch grid); single-buffered if possible."""
    zeros = (0,) * len(shape)
    index_map = lambda i: zeros
    if _single_buffered_supported():
        return pl.BlockSpec(shape, index_map, pipeline_mode=pl.Buffered(1))
    return pl.BlockSpec(shape, index_map)


# --------------------------------------------------------------------------- #
# Kernels.
# --------------------------------------------------------------------------- #

def _linear_kernel(x_ref, w_ref, b_ref, y_ref):
    """Pre-composed path: one MXU matmul + f32 bias add per batch tile."""
    y = jnp.dot(x_ref[...], w_ref[...], preferred_element_type=jnp.float32) + b_ref[...]
    y_ref[...] = y.astype(y_ref.dtype)  # lane-dense [TB, OUT_P] store


def _mlp_resident_kernel(x_ref, w1_ref, b1_ref, wh_ref, bh_ref, wl_ref, bl_ref, y_ref,
                         *, num_layer):
    """Layered path, all weights VMEM-resident. f32 accumulation, f32 bias adds."""
    wdt = w1_ref.dtype
    h = jnp.dot(x_ref[...], w1_ref[...], preferred_element_type=jnp.float32) + b1_ref[...]

    def body(i, h):
        return (jnp.dot(h.astype(wdt), wh_ref[i], preferred_element_type=jnp.float32)
                + bh_ref[i])

    # fori_loop keeps only one layer's weight tile live at a time; unroll small counts.
    h = lax.fori_loop(0, num_layer, body, h, unroll=(num_layer <= 4))

    y = jnp.dot(h.astype(wdt), wl_ref[...], preferred_element_type=jnp.float32) + bl_ref[...]
    y_ref[...] = y.astype(y_ref.dtype)


def _mlp_streamed_kernel(x_ref, w1_ref, b1_ref, bh_ref, wl_ref, bl_ref, wh_hbm, y_ref,
                         wbuf, sem, h_ref, *, num_layer):
    """Layered path with the hidden-layer weight stack streamed from HBM.

    Bounds weight VMEM to 2 * H_P^2 regardless of num_layer: prefetch layer i+1's
    (H_P, H_P) weight while layer i's matmul runs (manual double buffering).
    """
    wdt = w1_ref.dtype

    def fetch(layer, slot):
        pltpu.make_async_copy(wh_hbm.at[layer], wbuf.at[slot], sem.at[slot]).start()

    fetch(0, 0)  # prime layer 0 while fc1 runs
    h_ref[...] = (jnp.dot(x_ref[...], w1_ref[...], preferred_element_type=jnp.float32)
                  + b1_ref[...])

    @pl.loop(0, num_layer)
    def _(i):
        slot = i & 1
        pltpu.make_async_copy(wh_hbm.at[0], wbuf.at[slot], sem.at[slot]).wait()

        @pl.when(i + 1 < num_layer)
        def _():
            fetch(i + 1, 1 - slot)

        h_ref[...] = (jnp.dot(h_ref[...].astype(wdt), wbuf[slot],
                              preferred_element_type=jnp.float32) + bh_ref[i])

    y = (jnp.dot(h_ref[...].astype(wdt), wl_ref[...], preferred_element_type=jnp.float32)
         + bl_ref[...])
    y_ref[...] = y.astype(y_ref.dtype)


# --------------------------------------------------------------------------- #
# Parameter preparation (once per setup) and forward.
# --------------------------------------------------------------------------- #

def prepare_params(params, *, num_layer, input_dim, num_distribution, output_dim,
                   compute_dtype=jnp.bfloat16, precompose=False):
    """Pad / cast weights once (per setup, not per forward call).

    Zero padding is exact: padded input columns / weight rows contribute 0 to every
    dot product; padded output lanes are sliced away in the forward wrapper.
    """
    w1, b1, wh, bh, wl, bl = params
    in_dim = input_dim + num_distribution
    hidden = w1.shape[1]
    assert w1.shape[0] == in_dim
    assert wl.shape == (hidden, output_dim)
    wdt = jnp.dtype(compute_dtype)

    IN_P = _round_up(in_dim, 128)
    H_P = _round_up(hidden, 128)
    OUT_P = _round_up(output_dim, 128)

    if precompose:
        # Default flags disable batchnorm/dropout, so the stack is purely affine:
        # fold W = W1 @ Wh_0 @ ... @ Wl and the matching bias once, in f32.
        w = w1.astype(jnp.float32)
        b = b1.astype(jnp.float32)
        for i in range(num_layer):
            wi = wh[i].astype(jnp.float32)
            w = w @ wi
            b = b @ wi + bh[i].astype(jnp.float32)
        w = w @ wl.astype(jnp.float32)
        b = b @ wl.astype(jnp.float32) + bl.astype(jnp.float32)
        arrays = (jnp.pad(w.astype(wdt), ((0, IN_P - in_dim), (0, OUT_P - output_dim))),
                  jnp.pad(b, ((0, 0), (0, OUT_P - output_dim))))
        mode = "precomposed"
    else:
        assert num_layer >= 1 and wh.shape == (num_layer, hidden, hidden)
        arrays = (
            jnp.pad(w1.astype(wdt), ((0, IN_P - in_dim), (0, H_P - hidden))),
            jnp.pad(b1.astype(jnp.float32), ((0, 0), (0, H_P - hidden))),
            jnp.pad(wh.astype(wdt), ((0, 0), (0, H_P - hidden), (0, H_P - hidden))),
            jnp.pad(bh.astype(jnp.float32), ((0, 0), (0, 0), (0, H_P - hidden))),
            jnp.pad(wl.astype(wdt), ((0, H_P - hidden), (0, OUT_P - output_dim))),
            jnp.pad(bl.astype(jnp.float32), ((0, 0), (0, OUT_P - output_dim))),
        )
        mode = "layered"

    return dict(mode=mode, arrays=arrays, compute_dtype=wdt,
                num_layer=num_layer, in_dim=in_dim, hidden=hidden,
                num_distribution=num_distribution, output_dim=output_dim,
                IN_P=IN_P, H_P=H_P, OUT_P=OUT_P)


def different_weights_linear_forward(x, prepared, *, batch_tile=None, stream_weights=None):
    """x: [B, input_dim + num_distribution] f32. Returns [B, output_dim + num_distribution] f32."""
    mode = prepared["mode"]
    wdt = prepared["compute_dtype"]
    in_dim = prepared["in_dim"]
    num_layer = prepared["num_layer"]
    num_distribution = prepared["num_distribution"]
    output_dim = prepared["output_dim"]
    IN_P, H_P, OUT_P = prepared["IN_P"], prepared["H_P"], prepared["OUT_P"]
    itm = jnp.dtype(wdt).itemsize

    B = x.shape[0]
    assert x.shape[1] == in_dim

    # Batch tile: as large as possible (amortizes per-step overhead and MXU weight
    # pushes) without ballooning B_pad; split into >=2 grid steps when B allows so
    # both v7x TensorCores get work under dimension_semantics=("parallel",).
    if batch_tile is not None:
        TB = _round_up(int(batch_tile), 8)
    else:
        MAX_TB = 512
        n_tiles = max(1, -(-B // MAX_TB))
        TB = _round_up(-(-B // n_tiles), 8)
        if _round_up(B, TB) == TB and B >= 16:     # single-step grid: split for megacore
            TB = _round_up(-(-B // 2), 8)
    TB = min(TB, _round_up(B, 8))
    B_pad = _round_up(B, TB)
    grid = (B_pad // TB,)

    # Padded batch rows / input columns are zeros; extra rows/lanes are sliced away.
    xp = jnp.pad(x.astype(wdt), ((0, B_pad - B), (0, IN_P - in_dim)))

    # ------------------- generation-aware VMEM budgeting ------------------- #
    cap = _vmem_capacity_bytes()
    budget = cap - (16 << 20)                       # headroom for Mosaic internal scratch
    w_buf = 1 if _single_buffered_supported() else 2
    io_bytes = 2 * TB * (IN_P * itm + OUT_P * 4)    # double-buffered x / y tiles

    if mode == "precomposed":
        stream = False
        vmem_needed = w_buf * (IN_P * OUT_P * itm + OUT_P * 4) + io_bytes
    else:
        wh_bytes = num_layer * H_P * H_P * itm
        other_w = ((IN_P * H_P + H_P * OUT_P) * itm
                   + (H_P * (1 + num_layer) + OUT_P) * 4)
        act_bytes = 2 * TB * H_P * 4                # live h tile + matmul staging
        resident_need = w_buf * (wh_bytes + other_w) + io_bytes + act_bytes
        stream = (resident_need > budget) if stream_weights is None else bool(stream_weights)
        if stream:
            vmem_needed = (w_buf * other_w + 2 * H_P * H_P * itm
                           + TB * H_P * 4 + io_bytes + act_bytes)
        else:
            vmem_needed = resident_need

    cp_kwargs = dict(dimension_semantics=("parallel",))
    if vmem_needed > (12 << 20):                    # covers v5e's 16 MiB default limit
        cp_kwargs["vmem_limit_bytes"] = int(
            min(max(vmem_needed + (8 << 20), 32 << 20), budget))
    compiler_params = pltpu.CompilerParams(**cp_kwargs)

    x_spec = pl.BlockSpec((TB, IN_P), lambda i: (i, 0))
    y_spec = pl.BlockSpec((TB, OUT_P), lambda i: (i, 0))   # lane-dense 128-aligned store
    out_shape = jax.ShapeDtypeStruct((B_pad, OUT_P), jnp.float32)

    if mode == "precomposed":
        wp, bp = prepared["arrays"]
        y_pad = pl.pallas_call(
            _linear_kernel,
            out_shape=out_shape,
            grid=grid,
            in_specs=[x_spec, _resident_spec((IN_P, OUT_P)), _resident_spec((1, OUT_P))],
            out_specs=y_spec,
            compiler_params=compiler_params,
        )(xp, wp, bp)
    elif not stream:
        w1p, b1p, whp, bhp, wlp, blp = prepared["arrays"]
        y_pad = pl.pallas_call(
            functools.partial(_mlp_resident_kernel, num_layer=num_layer),
            out_shape=out_shape,
            grid=grid,
            in_specs=[
                x_spec,
                _resident_spec((IN_P, H_P)),
                _resident_spec((1, H_P)),
                _resident_spec((num_layer, H_P, H_P)),
                _resident_spec((num_layer, 1, H_P)),
                _resident_spec((H_P, OUT_P)),
                _resident_spec((1, OUT_P)),
            ],
            out_specs=y_spec,
            compiler_params=compiler_params,
        )(xp, w1p, b1p, whp, bhp, wlp, blp)
    else:
        w1p, b1p, whp, bhp, wlp, blp = prepared["arrays"]
        y_pad = pl.pallas_call(
            functools.partial(_mlp_streamed_kernel, num_layer=num_layer),
            out_shape=out_shape,
            grid_spec=pltpu.PrefetchScalarGridSpec(
                num_scalar_prefetch=0,
                grid=grid,
                in_specs=[
                    x_spec,
                    _resident_spec((IN_P, H_P)),
                    _resident_spec((1, H_P)),
                    _resident_spec((num_layer, 1, H_P)),
                    _resident_spec((H_P, OUT_P)),
                    _resident_spec((1, OUT_P)),
                    pl.BlockSpec(memory_space=pl.ANY),     # wh stack stays in HBM
                ],
                out_specs=y_spec,
                scratch_shapes=[
                    pltpu.VMEM((2, H_P, H_P), wdt),        # double-buffered layer weight
                    pltpu.SemaphoreType.DMA((2,)),
                    pltpu.VMEM((TB, H_P), jnp.float32),    # f32 activation carry
                ],
            ),
            compiler_params=compiler_params,
        )(xp, w1p, b1p, bhp, wlp, blp, whp)

    y = y_pad[:B, :output_dim]
    # torch.cat([x, input[:, -num_distribution:]], axis=1): pure column copy done in
    # XLA so the kernel output stays a dense 128-aligned f32 tile (and the tail stays
    # exact f32 even when the matmuls run in bf16).
    tail = x[:, in_dim - num_distribution:].astype(y.dtype)
    return jnp.concatenate([y, tail], axis=1)


# --------------------------------------------------------------------------- #
# Reference / init helpers.
# --------------------------------------------------------------------------- #

def init_params(key, *, input_dim, output_dim, num_distribution, hidden_dim, num_layer):
    """Deterministic init mimicking nn.Linear's U(-1/sqrt(fan_in), 1/sqrt(fan_in)).
    Weights stored pre-transposed as [in, out] so the kernel computes x @ W + b."""
    in_dim = input_dim + num_distribution
    keys = jax.random.split(key, 6)

    def u(k, shape, fan_in):
        bound = 1.0 / jnp.sqrt(fan_in)
        return jax.random.uniform(k, shape, jnp.float32, -bound, bound)

    w1 = u(keys[0], (in_dim, hidden_dim), in_dim)
    b1 = u(keys[1], (1, hidden_dim), in_dim)
    wh = u(keys[2], (num_layer, hidden_dim, hidden_dim), hidden_dim)
    bh = u(keys[3], (num_layer, 1, hidden_dim), hidden_dim)
    wl = u(keys[4], (hidden_dim, output_dim), hidden_dim)
    bl = u(keys[5], (1, output_dim), hidden_dim)
    return (w1, b1, wh, bh, wl, bl)


def reference_forward(x, params, *, num_layer, num_distribution):
    w1, b1, wh, bh, wl, bl = params
    h = x @ w1 + b1
    for i in range(num_layer):
        h = h @ wh[i] + bh[i]
    y = h @ wl + bl
    return jnp.concatenate([y, x[:, -num_distribution:]], axis=1)


if __name__ == "__main__":
    key = jax.random.PRNGKey(0)

    cases = [
        # (config, compute_dtype, precompose, stream_weights, tolerance)
        (dict(input_dim=4, num_distribution=2, output_dim=3, hidden_dim=32,
              num_layer=2, batch=8), jnp.float32, False, None, 1e-4),
        # exercises batch / feature padding paths (B not multiple of 8, hidden=96)
        (dict(input_dim=10, num_distribution=3, output_dim=7, hidden_dim=96,
              num_layer=3, batch=20), jnp.float32, False, None, 1e-4),
        # default bf16 MXU path (f32 accumulation); loose tolerance vs f32 reference
        (dict(input_dim=10, num_distribution=3, output_dim=7, hidden_dim=96,
              num_layer=3, batch=20), jnp.bfloat16, False, None, 1e-1),
        # pre-composed single-matmul path (default flags => the stack is purely affine)
        (dict(input_dim=10, num_distribution=3, output_dim=7, hidden_dim=96,
              num_layer=3, batch=20), jnp.float32, True, None, 1e-4),
        # force the streamed-weight (manual double-buffered DMA) path at small shapes
        (dict(input_dim=6, num_distribution=2, output_dim=5, hidden_dim=64,
              num_layer=3, batch=24), jnp.float32, False, True, 1e-4),
    ]

    for cfg, cdt, precompose, stream, tol in cases:
        key, k_x, k_p = jax.random.split(key, 3)
        x = jax.random.normal(
            k_x, (cfg["batch"], cfg["input_dim"] + cfg["num_distribution"]), jnp.float32)
        params = init_params(
            k_p, input_dim=cfg["input_dim"], output_dim=cfg["output_dim"],
            num_distribution=cfg["num_distribution"], hidden_dim=cfg["hidden_dim"],
            num_layer=cfg["num_layer"])
        prepared = prepare_params(
            params, num_layer=cfg["num_layer"], input_dim=cfg["input_dim"],
            num_distribution=cfg["num_distribution"], output_dim=cfg["output_dim"],
            compute_dtype=cdt, precompose=precompose)

        out = different_weights_linear_forward(x, prepared, stream_weights=stream)
        out = jax.block_until_ready(out)

        ref = reference_forward(x, params, num_layer=cfg["num_layer"],
                                num_distribution=cfg["num_distribution"])
        assert out.shape == (cfg["batch"], cfg["output_dim"] + cfg["num_distribution"])
        assert jnp.allclose(out, ref, atol=tol, rtol=tol), (
            f"mismatch vs pure-JAX reference: {cfg}, dtype={cdt}, "
            f"precompose={precompose}, stream={stream}")

    print("KERNEL_OK")
</pallas_src>

<mosaic_0001>
module attributes {stable_mosaic.version = 11 : i64} {
  func.func @_probe(%arg0: i32, %arg1: memref<8x128xf32, #tpu.memory_space<vmem>>, %arg2: memref<8x128xf32, #tpu.memory_space<vmem>>, %arg3: memref<2x8x128xf32, #tpu.memory_space<vmem>>, %arg4: memref<8x128xf32, #tpu.memory_space<vmem>>) attributes {dimension_semantics = [#tpu.dimension_semantics<arbitrary>], iteration_bounds = array<i64: 2>, scalar_prefetch = 0 : i64, scratch_operands = 0 : i64, tpu.core_type = #tpu.core_type<tc>, window_params = [{transform_indices = @transform_0, window_bounds = array<i64: 8, 128>}, {pipeline_mode = #tpu.pipeline_mode<synchronous>, transform_indices = @transform_1, window_bounds = array<i64: 8, 128>}, {pipeline_mode = #tpu.pipeline_mode<synchronous>, transform_indices = @transform_2, window_bounds = array<i64: 2, 8, 128>}, {transform_indices = @transform_3, window_bounds = array<i64: 8, 128>}]} {
    %c0 = arith.constant 0 : index
    %c0_0 = arith.constant 0 : index
    %0 = vector.load %arg1[%c0, %c0_0] : memref<8x128xf32, #tpu.memory_space<vmem>>, vector<8x128xf32>
    %c0_1 = arith.constant 0 : index
    %c0_2 = arith.constant 0 : index
    %1 = vector.load %arg2[%c0_1, %c0_2] : memref<8x128xf32, #tpu.memory_space<vmem>>, vector<8x128xf32>
    %2 = arith.addf %0, %1 : vector<8x128xf32>
    %c0_3 = arith.constant 0 : index
    %c0_4 = arith.constant 0 : index
    %c0_5 = arith.constant 0 : index
    %3 = vector.load %arg3[%c0_3, %c0_4, %c0_5] : memref<2x8x128xf32, #tpu.memory_space<vmem>>, vector<1x8x128xf32>
    %4 = vector.shape_cast %3 : vector<1x8x128xf32> to vector<8x128xf32>
    %5 = arith.addf %2, %4 : vector<8x128xf32>
    %c0_6 = arith.constant 0 : index
    %c0_7 = arith.constant 0 : index
    %6 = vector.load %arg4[%c0_6, %c0_7] : memref<8x128xf32, #tpu.memory_space<vmem>>, vector<8x128xf32>
    tpu.vector_store %arg4[%c0_6, %c0_7], %5 {strides = array<i32>} : memref<8x128xf32, #tpu.memory_space<vmem>>, vector<8x128xf32>,
    return
  }
  func.func @transform_0(%arg0: i32) -> (i32, i32) {
    %c0_i32 = arith.constant 0 : i32
    %c0_i32_0 = arith.constant 0 : i32
    return %arg0, %c0_i32 : i32, i32
  }
  func.func @transform_1(%arg0: i32) -> (i32, i32) {
    %c0_i32 = arith.constant 0 : i32
    %c0_i32_0 = arith.constant 0 : i32
    %c0_i32_1 = arith.constant 0 : i32
    return %c0_i32, %c0_i32_0 : i32, i32
  }
  func.func @transform_2(%arg0: i32) -> (i32, i32, i32) {
    %c0_i32 = arith.constant 0 : i32
    %c0_i32_0 = arith.constant 0 : i32
    %c0_i32_1 = arith.constant 0 : i32
    %c0_i32_2 = arith.constant 0 : i32
    return %c0_i32, %c0_i32_0, %c0_i32_1 : i32, i32, i32
  }
  func.func @transform_3(%arg0: i32) -> (i32, i32) {
    %c0_i32 = arith.constant 0 : i32
    %c0_i32_0 = arith.constant 0 : i32
    return %arg0, %c0_i32 : i32, i32
  }
}

module attributes {stable_mosaic.version = 11 : i64} {
  func.func @_mlp_resident_kernel(%arg0: i32, %arg1: memref<8x128xf32, #tpu.memory_space<vmem>>, %arg2: memref<128x128xf32, #tpu.memory_space<vmem>>, %arg3: memref<1x128xf32, #tpu.memory_space<vmem>>, %arg4: memref<2x128x128xf32, #tpu.memory_space<vmem>>, %arg5: memref<2x1x128xf32, #tpu.memory_space<vmem>>, %arg6: memref<128x128xf32, #tpu.memory_space<vmem>>, %arg7: memref<1x128xf32, #tpu.memory_space<vmem>>, %arg8: memref<8x128xf32, #tpu.memory_space<vmem>>) attributes {dimension_semantics = [#tpu.dimension_semantics<parallel>], iteration_bounds = array<i64: 1>, scalar_prefetch = 0 : i64, scratch_operands = 0 : i64, tpu.core_type = #tpu.core_type<tc>, window_params = [{transform_indices = @transform_0, window_bounds = array<i64: 8, 128>}, {pipeline_mode = #tpu.pipeline_mode<synchronous>, transform_indices = @transform_1, window_bounds = array<i64: 128, 128>}, {pipeline_mode = #tpu.pipeline_mode<synchronous>, transform_indices = @transform_2, window_bounds = array<i64: 1, 128>}, {pipeline_mode = #tpu.pipeline_mode<synchronous>, transform_indices = @transform_3, window_bounds = array<i64: 2, 128, 128>}, {pipeline_mode = #tpu.pipeline_mode<synchronous>, transform_indices = @transform_4, window_bounds = array<i64: 2, 1, 128>}, {pipeline_mode = #tpu.pipeline_mode<synchronous>, transform_indices = @transform_5, window_bounds = array<i64: 128, 128>}, {pipeline_mode = #tpu.pipeline_mode<synchronous>, transform_indices = @transform_6, window_bounds = array<i64: 1, 128>}, {transform_indices = @transform_7, window_bounds = array<i64: 8, 128>}]} {
    %c0 = arith.constant 0 : index
    %c0_0 = arith.constant 0 : index
    %0 = vector.load %arg1[%c0, %c0_0] : memref<8x128xf32, #tpu.memory_space<vmem>>, vector<8x128xf32>
    %c0_1 = arith.constant 0 : index
    %c0_2 = arith.constant 0 : index
    %1 = vector.load %arg2[%c0_1, %c0_2] : memref<128x128xf32, #tpu.memory_space<vmem>>, vector<128x128xf32>
    %cst = arith.constant dense<0.000000e+00> : vector<8x128xf32>
    %2 = tpu.matmul %0, %1, %cst {dimension_numbers = #tpu.dot_dimension_numbers<[1], [0], [0], [1], [0, 0, 1, 1], [], []>} : vector<8x128xf32>, vector<128x128xf32>, vector<8x128xf32> -> vector<8x128xf32>
    %c0_3 = arith.constant 0 : index
    %c0_4 = arith.constant 0 : index
    %3 = vector.load %arg3[%c0_3, %c0_4] : memref<1x128xf32, #tpu.memory_space<vmem>>, vector<1x128xf32>
    %4 = vector.broadcast %3 : vector<1x128xf32> to vector<8x128xf32>
    %5 = arith.addf %2, %4 : vector<8x128xf32>
    %c0_i32 = arith.constant 0 : i32
    %6 = arith.index_cast %c0_i32 : i32 to index
    %c0_5 = arith.constant 0 : index
    %c0_6 = arith.constant 0 : index
    %7 = vector.load %arg4[%6, %c0_5, %c0_6] : memref<2x128x128xf32, #tpu.memory_space<vmem>>, vector<1x128x128xf32>
    %8 = vector.shape_cast %7 : vector<1x128x128xf32> to vector<128x128xf32>
    %cst_7 = arith.constant dense<0.000000e+00> : vector<8x128xf32>
    %9 = tpu.matmul %5, %8, %cst_7 {dimension_numbers = #tpu.dot_dimension_numbers<[1], [0], [0], [1], [0, 0, 1, 1], [], []>} : vector<8x128xf32>, vector<128x128xf32>, vector<8x128xf32> -> vector<8x128xf32>
    %10 = arith.index_cast %c0_i32 : i32 to index
    %c0_8 = arith.constant 0 : index
    %c0_9 = arith.constant 0 : index
    %11 = vector.load %arg5[%10, %c0_8, %c0_9] : memref<2x1x128xf32, #tpu.memory_space<vmem>>, vector<1x1x128xf32>
    %12 = vector.shape_cast %11 : vector<1x1x128xf32> to vector<1x128xf32>
    %13 = vector.broadcast %12 : vector<1x128xf32> to vector<8x128xf32>
    %14 = arith.addf %9, %13 : vector<8x128xf32>
    %c1_i32 = arith.constant 1 : i32
    %15 = arith.index_cast %c1_i32 : i32 to index
    %c0_10 = arith.constant 0 : index
    %c0_11 = arith.constant 0 : index
    %16 = vector.load %arg4[%15, %c0_10, %c0_11] : memref<2x128x128xf32, #tpu.memory_space<vmem>>, vector<1x128x128xf32>
    %17 = vector.shape_cast %16 : vector<1x128x128xf32> to vector<128x128xf32>
    %cst_12 = arith.constant dense<0.000000e+00> : vector<8x128xf32>
    %18 = tpu.matmul %14, %17, %cst_12 {dimension_numbers = #tpu.dot_dimension_numbers<[1], [0], [0], [1], [0, 0, 1, 1], [], []>} : vector<8x128xf32>, vector<128x128xf32>, vector<8x128xf32> -> vector<8x128xf32>
    %19 = arith.index_cast %c1_i32 : i32 to index
    %c0_13 = arith.constant 0 : index
    %c0_14 = arith.constant 0 : index
    %20 = vector.load %arg5[%19, %c0_13, %c0_14] : memref<2x1x128xf32, #tpu.memory_space<vmem>>, vector<1x1x128xf32>
    %21 = vector.shape_cast %20 : vector<1x1x128xf32> to vector<1x128xf32>
    %22 = vector.broadcast %21 : vector<1x128xf32> to vector<8x128xf32>
    %23 = arith.addf %18, %22 : vector<8x128xf32>
    %c2_i32 = arith.constant 2 : i32
    %c0_15 = arith.constant 0 : index
    %c0_16 = arith.constant 0 : index
    %24 = vector.load %arg6[%c0_15, %c0_16] : memref<128x128xf32, #tpu.memory_space<vmem>>, vector<128x128xf32>
    %cst_17 = arith.constant dense<0.000000e+00> : vector<8x128xf32>
    %25 = tpu.matmul %23, %24, %cst_17 {dimension_numbers = #tpu.dot_dimension_numbers<[1], [0], [0], [1], [0, 0, 1, 1], [], []>} : vector<8x128xf32>, vector<128x128xf32>, vector<8x128xf32> -> vector<8x128xf32>
    %c0_18 = arith.constant 0 : index
    %c0_19 = arith.constant 0 : index
    %26 = vector.load %arg7[%c0_18, %c0_19] : memref<1x128xf32, #tpu.memory_space<vmem>>, vector<1x128xf32>
    %27 = vector.broadcast %26 : vector<1x128xf32> to vector<8x128xf32>
    %28 = arith.addf %25, %27 : vector<8x128xf32>
    %c0_20 = arith.constant 0 : index
    %c0_21 = arith.constant 0 : index
    %29 = vector.load %arg8[%c0_20, %c0_21] : memref<8x128xf32, #tpu.memory_space<vmem>>, vector<8x128xf32>
    tpu.vector_store %arg8[%c0_20, %c0_21], %28 {strides = array<i32>} : memref<8x128xf32, #tpu.memory_space<vmem>>, vector<8x128xf32>,
    return
  }
  func.func @transform_0(%arg0: i32) -> (i32, i32) {
    %c0_i32 = arith.constant 0 : i32
    %c0_i32_0 = arith.constant 0 : i32
    return %arg0, %c0_i32 : i32, i32
  }
  func.func @transform_1(%arg0: i32) -> (i32, i32) {
    %c0_i32 = arith.constant 0 : i32
    %c0_i32_0 = arith.constant 0 : i32
    %c0_i32_1 = arith.constant 0 : i32
    return %c0_i32, %c0_i32_0 : i32, i32
  }
  func.func @transform_2(%arg0: i32) -> (i32, i32) {
    %c0_i32 = arith.constant 0 : i32
    %c0_i32_0 = arith.constant 0 : i32
    %c0_i32_1 = arith.constant 0 : i32
    return %c0_i32, %c0_i32_0 : i32, i32
  }
  func.func @transform_3(%arg0: i32) -> (i32, i32, i32) {
    %c0_i32 = arith.constant 0 : i32
    %c0_i32_0 = arith.constant 0 : i32
    %c0_i32_1 = arith.constant 0 : i32
    %c0_i32_2 = arith.constant 0 : i32
    return %c0_i32, %c0_i32_0, %c0_i32_1 : i32, i32, i32
  }
  func.func @transform_4(%arg0: i32) -> (i32, i32, i32) {
    %c0_i32 = arith.constant 0 : i32
    %c0_i32_0 = arith.constant 0 : i32
    %c0_i32_1 = arith.constant 0 : i32
    %c0_i32_2 = arith.constant 0 : i32
    return %c0_i32, %c0_i32_0, %c0_i32_1 : i32, i32, i32
  }
  func.func @transform_5(%arg0: i32) -> (i32, i32) {
    %c0_i32 = arith.constant 0 : i32
    %c0_i32_0 = arith.constant 0 : i32
    %c0_i32_1 = arith.constant 0 : i32
    return %c0_i32, %c0_i32_0 : i32, i32
  }
  func.func @transform_6(%arg0: i32) -> (i32, i32) {
    %c0_i32 = arith.constant 0 : i32
    %c0_i32_0 = arith.constant 0 : i32
    %c0_i32_1 = arith.constant 0 : i32
    return %c0_i32, %c0_i32_0 : i32, i32
  }
  func.func @transform_7(%arg0: i32) -> (i32, i32) {
    %c0_i32 = arith.constant 0 : i32
    %c0_i32_0 = arith.constant 0 : i32
    return %arg0, %c0_i32 : i32, i32
  }
}

</mosaic_0001>

<bundles_post_ra>
// kernel: tpu_custom_call.1
= control target key start
LH: loop header
LB: loop body
LE: loop exit
PB: predicated region body
PF: predicated region fallthrough
CT: control target
= control target key end

     0   :  { %8 = vsyncpa [#allocation3], 0  ;;  %s748_s0 = inlined_call_operand.hbm [shape: f32[16,128], index: 0, kind: input, shape index: {}]   ;;  %s749_s1 = inlined_call_operand.hbm [shape: f32[8,128], index: 1, kind: input, shape index: {}]   ;;  %s750_s2 = inlined_call_operand.hbm [shape: f32[2,8,128], index: 2, kind: input, shape index: {}]   ;;  %s751_s3 = inlined_call_operand.hbm [shape: f32[16,128], index: 3, kind: output, shape index: {}]  }
   0x1   :  { %10 = vsyncpa [#allocation3 + $0x1], 0 }
   0x2   :  { %11 = vsyncpa [#allocation6], 0 }
   0x3   :  { %12 = vsyncpa [#allocation4], 0 }
   0x4   :  { %14 = vsyncpa [#allocation4 + $0x1], 0  ;;  %s583_s12 = smov 0   ;;  %s585_s13 = smov 0  }
   0x5   :  { %s587_s14 = smov 0   ;;  %s589_s15 = smov 0  }
   0x6 LB: > { %s604_s16 = sadd.s32 4294967295, %s555_s15   ;;  %s322_s17 = sadd.s32 4294967294, %s555_s15   ;;  %s555_s15 = sphi %s589_s15, %s773_s15   ;;  %s551_s14 = sphi %s587_s14, %s772_s14   ;;  %s547_s13 = sphi %s585_s13, %s771_s13   ;;  %s543_s12 = sphi %s583_s12, %s770_s12  }
   0x7   : > { %p40_p0 = scmp.ne.s32.totalorder %s547_s13, %s543_s12  ;;  %p752_p1 = scmp.eq.s32.totalorder %s604_s16, 0 }
   0x8   : > { %p112_p3 = scmp.eq.s32.totalorder %s322_s17, 1  ;;  %p323_p5 = scmp.ge.s32.totalorder %s555_s15, 1 }
   0x9   : > { %p613_p4 = por %p752_p1, %p40_p0  ;;  %p119_p7 = scmp.lt.s32.totalorder %s555_s15, 3 }
   0xa   : > { %p618_p6 = por %p112_p3, %p40_p0  ;;  %s557_s21 = smov [#allocation5]  }
   0xb   : > { %s756_s18 = scalar_select %p613_p4, 1, 0 }
   0xc   : > { %s757_s19 = scalar_select %p618_p6, 1, 0 }
   0xd   : > { %p623_p8 = pnand %p323_p5, %p119_p7  ;;  %s132_s22 = sshll.u32 %s557_s21, 4  ;;  %s133_s22 = int_to_ptr.vmem [resolvable:$true] %s132_s22 }
   0xe   : > { %s558_s23 = smov [#allocation7]   ;;  %s418_s26 = scalar_lea.vmem %s133_s22, 128 }
   0xf   : > { %s758_s20 = scalar_select %p623_p8, 1, 0 }
  0x10   : > { %p350_p10 = pneg %p623_p8  ;;  %s142_s24 = sshll.u32 %s558_s23, 4  ;;  %s143_s24 = int_to_ptr.vmem [resolvable:$true] %s142_s24 }
  0x11   : > { %p419_p13 = scmp.ne.s32.totalorder %s133_s22, %s418_s26  ;;  %p426_p5 = scmp.lt.s32.totalorder %s133_s22, %s133_s22 }
  0x12   : > { %p632_p11 = pnand %p350_p10, %p752_p1  ;;  %p427_p7 = scmp.lt.s32.totalorder %s418_s26, %s418_s26 }
  0x14   : > { %p409_p12 = pneg %p632_p11  ;;  %p428_p9 = por %p427_p7, %p426_p5 }
  0x16   : > { %p421_p0 = pnand %p419_p13, %p409_p12 }
  0x18   : > { %p422_p3 = pneg %p421_p0 }
  0x1a   : > { %p429_p2 = pnand %p428_p9, %p422_p3 }
  0x1c   : > { %432 = shalt.err (!%p429_p2)
}
  0x1d   : > { %353 = dma.hbm_to_vmem [thread:$0]  (!%p632_p11), %s749_s1, 128, %s133_s22, [#allocation6]  }
  0x1e   : > { %s444_s29 = scalar_lea.vmem %s143_s24, 256  ;;  %p452_p13 = scmp.lt.s32.totalorder %s143_s24, %s143_s24 }
  0x1f   : > { %p445_p10 = scmp.ne.s32.totalorder %s143_s24, %s444_s29  ;;  %p453_p0 = scmp.lt.s32.totalorder %s444_s29, %s444_s29 }
  0x21   : > { %p447_p1 = pnand %p445_p10, %p409_p12  ;;  %p454_p4 = por %p453_p0, %p452_p13 }
  0x23   : > { %p448_p6 = pneg %p447_p1 }
  0x25   : > { %p455_p8 = pnand %p454_p4, %p448_p6 }
  0x27   : > { %458 = shalt.err (!%p455_p8)
}
  0x28   : > { %s559_s30 = smov 128   ;;  %s560_s4 = smov 8  }
  0x29   : > { %356 = dma.hbm_to_vmem [thread:$0]  (!%p632_p11), %s750_s2, 256, %s143_s24, [#allocation6], %s559_s30, %s559_s30, %s560_s4  }
  0x2a   : > { %s655_s7 = sadd.s32 1, %s555_s15   ;;  %s27_s8 = sadd.s32 1, %s551_s14 }
  0x2b   : > { %s24_s9 = ssub.s32 %s555_s15, %s655_s7  ;;  %p34_p1 = scmp.ne.s32.totalorder %s551_s14, %s547_s13 }
  0x2c   : > { %p25_p2 = scmp.eq.s32.totalorder %s24_s9, 0  ;;  %p35_p4 = scmp.eq.s32.totalorder %s555_s15, 0 }
  0x2d   : > { %p760_p6 = scmp.eq.s32.totalorder %s604_s16, 1  ;;  %p367_p9 = scmp.lt.s32.totalorder %s555_s15, 2 }
  0x2e   : > { %s671_s11 = scalar_select %p25_p2, %s551_s14, %s27_s8  }
  0x2f   : > { %p665_p8 = por %p760_p6, %p34_p1  ;;  %p36_p12 = por %p35_p4, %p34_p1 }
  0x30   : > { %s156_s17 = sand.u32 1, %s551_s14   ;;  %s328_s22 = sshll.u32 %s555_s15, 7 }
  0x31   : > { %s761_s10 = scalar_select %p665_p8, 1, 0 }
  0x32   : > { %s327_s21 = sshll.u32 %s156_s17, 3  ;;  %s678_s25 = scalar_lea.hbm %s748_s0, %s328_s22 }
  0x33   : > { %s160_s26 = scalar_lea.vmem [#allocation2], %s327_s21  ;;  %p680_p11 = pnand %p367_p9, %p36_p12 }
  0x34   : > { %s167_s27 = sshll.u32 %s160_s26, 4  ;;  %s157_s29 = scalar_lea.sflag [#allocation3], %s156_s17  ;;  %s168_s27 = int_to_ptr.vmem [resolvable:$true] %s167_s27 }
  0x35   : > { %s459_s30 = scalar_lea.hbm %s678_s25, 128  ;;  %p461_p5 = pneg %p680_p11 }
  0x36   : > { %p460_p3 = scmp.ne.s32.totalorder %s678_s25, %s459_s30  ;;  %s464_s6 = scalar_lea.hbm %s748_s0, 256 }
  0x37   : > { %p465_p13 = scmp.lt.s32.totalorder %s678_s25, %s748_s0  ;;  %p466_p0 = scmp.lt.s32.totalorder %s464_s6, %s459_s30 }
  0x38   : > { %p462_p7 = pnand %p461_p5, %p460_p3 }
  0x39   : > { %p467_p1 = por %p466_p0, %p465_p13 }
  0x3a   : > { %p463_p10 = pneg %p462_p7 }
  0x3c   : > { %p468_p2 = pnand %p467_p1, %p463_p10 }
  0x3e   : > { %471 = shalt.err (!%p468_p2)
}
  0x3f   : > { %s472_s21 = scalar_lea.vmem %s168_s27, 128  ;;  %s561_s17 = smov [#allocation2]  }
  0x40   : > { %p473_p4 = scmp.ne.s32.totalorder %s168_s27, %s472_s21  ;;  %s477_s22 = sshll.u32 %s561_s17, 4  ;;  %s478_s22 = int_to_ptr.vmem [resolvable:$false] %s477_s22 }
  0x41   : > { %s479_s23 = scalar_lea.vmem %s478_s22, 256  ;;  %p480_p12 = scmp.lt.s32.totalorder %s168_s27, %s478_s22 }
  0x42   : > { %p475_p6 = pnand %p473_p4, %p461_p5  ;;  %p481_p3 = scmp.lt.s32.totalorder %s479_s23, %s472_s21 }
  0x44   : > { %p476_p9 = pneg %p475_p6  ;;  %p482_p7 = por %p481_p3, %p480_p12 }
  0x46   : > { %p483_p8 = pnand %p482_p7, %p476_p9 }
  0x48   : > { %486 = shalt.err (!%p483_p8)
}
  0x49   : > { %360 = dma.hbm_to_vmem [thread:$0]  (!%p680_p11), %s678_s25, 128, %s168_s27, %s157_s29  }
  0x4a   : > { %p763_p10 = scmp.ne.s32.totalorder %s758_s20, 0 }
  0x4b   : > { %s701_s24 = sand.u32 (!%p763_p10), 1, %s547_s13   ;;  %p764_p5 = scmp.ne.s32.totalorder (!%p763_p10), %s756_s18, 0 }
  0x4c   : > { %176 = sbr.rel (%p763_p10) target bundleno = 110 (0x6e), region = 32  ;;  %s330_s26 = sshll.u32 (!%p763_p10), %s701_s24, 3 }
  0x4d   : > { %s179_s30 = scalar_lea.sflag (!%p763_p10), [#allocation3], %s701_s24  ;;  %s182_s4 = scalar_lea.vmem (!%p763_p10), [#allocation2], %s330_s26 }
  0x51   : > { %530 = dma.done.wait (%p764_p5), %s179_s30, 128  }
  0x52   : > { %532 = vsyncadd (%p764_p5), %s179_s30, 4294967168  ;;  %p765_p8 = scmp.eq.s32.totalorder %s604_s16, 0 }
  0x54   : > { %534 = dma.done.wait (%p765_p8), [#allocation6], 384   ;;  %p766_p11 = pmov %p765_p8 }
  0x55   : > { %v213_v0 = vld [vmem:[%s182_s4] sm:$0xff]  ;;  %v214_v1 = vld [vmem:[#allocation5] sm:$0xff]  ;;  %v216_v2 = vld [vmem:[#allocation7] sm:$0xff]  ;;  %s212_s20 = scalar_lea.vmem [#allocation8], %s330_s26  ;;  %s335_s27 = sshll.u32 %s604_s16, 7 }
  0x56   : > { %536 = vsyncadd (%p766_p11), [#allocation6], 4294966912  ;;  %s233_s25 = sshll.u32 %s212_s20, 4  ;;  %v215_v3 = vadd.f32 %v214_v1, %v213_v0  ;;  %s231_s29 = scalar_lea.hbm %s751_s3, %s335_s27  ;;  %s234_s25 = int_to_ptr.vmem [resolvable:$true] %s233_s25 }
  0x57   : > { %s220_s5 = scalar_lea.sflag [#allocation4], %s701_s24  ;;  %s487_s6 = scalar_lea.vmem %s234_s25, 128 }
  0x58   : > { %v217_v4 = vadd.f32 %v216_v2, %v215_v3  ;;  %p488_p13 = scmp.ne.s32.totalorder %s234_s25, %s487_s6  ;;  %p767_p0 = scmp.ne.s32.totalorder %s761_s10, 0 }
  0x59   : > { %s562_s8 = smov [#allocation8]  }
  0x5a   : > { %218 = vst [vmem:[%s212_s20] sm:$0xff] %v217_v4  ;;  %p489_p1 = pnand %p488_p13, %p767_p0  ;;  %s491_s9 = sshll.u32 %s562_s8, 4  ;;  %s492_s9 = int_to_ptr.vmem [resolvable:$false] %s491_s9 }
  0x5b   : > { %s493_s21 = scalar_lea.vmem %s492_s9, 256  ;;  %p494_p4 = scmp.lt.s32.totalorder %s234_s25, %s492_s9 }
  0x5c   : > { %p490_p2 = pneg %p489_p1  ;;  %p495_p6 = scmp.lt.s32.totalorder %s493_s21, %s487_s6 }
  0x5e   : > { %p496_p9 = por %p495_p6, %p494_p4 }
  0x60   : > { %p497_p12 = pnand %p496_p9, %p490_p2 }
  0x62   : > { %500 = shalt.err (!%p497_p12)
}
  0x63   : > { %s501_s16 = scalar_lea.hbm %s231_s29, 128  ;;  %s505_s23 = scalar_lea.hbm %s751_s3, 256 }
  0x64   : > { %p502_p3 = scmp.ne.s32.totalorder %s231_s29, %s501_s16  ;;  %p506_p5 = scmp.lt.s32.totalorder %s231_s29, %s751_s3 }
  0x65   : > { %p507_p8 = scmp.lt.s32.totalorder %s505_s23, %s501_s16 }
  0x66   : > { %p503_p7 = pnand %p502_p3, %p767_p0 }
  0x67   : > { %p508_p11 = por %p507_p8, %p506_p5 }
  0x68   : > { %p504_p10 = pneg %p503_p7 }
  0x6a   : > { %p509_p13 = pnand %p508_p11, %p504_p10 }
  0x6c   : > { %512 = shalt.err (!%p509_p13)
}
  0x6d   : > { %348 = dma.vmem_to_hbm [thread:$0]  (%p767_p0), %s234_s25, 128, %s231_s29, %s220_s5  }
  0x6e PF: > { %s245_s30 = sand.u32 1, %s543_s12   ;;  %p768_p1 = scmp.ne.s32.totalorder %s757_s19, 0 }
  0x6f   : > { %p769_p2 = scmp.ge.s32.totalorder %s555_s15, 2  ;;  %s246_s4 = scalar_lea.sflag [#allocation4], %s245_s30 }
  0x71   : > { %p362_p4 = pnand %p769_p2, %p768_p1 }
  0x73   : > { %p363_p6 = pneg %p362_p4 }
  0x75   : > { %538 = dma.done.wait (%p363_p6), %s246_s4, 128  }
  0x76   : > { %540 = vsyncadd (%p363_p6), %s246_s4, 4294967168  ;;  %p17_p9 = scmp.ge.s32.totalorder %s655_s7, 4   ;;  %s770_s12 = smov %s547_s13 }
  0x77   : > { %s771_s13 = smov %s551_s14  ;;  %s772_s14 = smov %s671_s11 }
  0x78   : > { %s773_s15 = smov %s655_s7  ;;  %19 = sbr.rel (!%p17_p9) target bundleno = 6 (0x6), region = 85 }
  0x7d   :  { %251 = vsyncpa [#allocation3], 1 }
  0x7e   :  { %253 = vsyncpa [#allocation3 + $0x1], 1 }
  0x7f   :  { %254 = vsyncpa [#allocation6], 1 }
  0x80   :  { %255 = vsyncpa [#allocation4], 1 }
  0x81   :  { %257 = vsyncpa [#allocation4 + $0x1], 1 }

// kernel: tpu_custom_call.1
= control target key start
LH: loop header
LB: loop body
LE: loop exit
PB: predicated region body
PF: predicated region fallthrough
CT: control target
= control target key end

     0   :  { %12 = vsyncpa [#allocation3], 0  ;;  %s960_s0 = inlined_call_operand.hbm [shape: f32[8,128], index: 0, kind: input, shape index: {}]   ;;  %s961_s1 = inlined_call_operand.hbm [shape: f32[128,128], index: 1, kind: input, shape index: {}]   ;;  %s962_s2 = inlined_call_operand.vmem [shape: f32[1,128], index: 2, kind: input, shape index: {}]   ;;  %s963_s3 = inlined_call_operand.hbm [shape: f32[2,128,128], index: 3, kind: input, shape index: {}]   ;;  %s964_s4 = inlined_call_operand.vmem [shape: f32[2,1,128], index: 4, kind: input, shape index: {}]   ;;  %s965_s5 = inlined_call_operand.hbm [shape: f32[128,128], index: 5, kind: input, shape index: {}]   ;;  %s966_s6 = inlined_call_operand.vmem [shape: f32[1,128], index: 6, kind: input, shape index: {}]   ;;  %s967_s7 = inlined_call_operand.hbm [shape: f32[8,128], index: 7, kind: output, shape index: {}]  }
   0x1   :  { %13 = vsyncpa [#allocation6], 0 }
   0x2   :  { %14 = vsyncpa [#allocation9], 0 }
   0x3   :  { %15 = vsyncpa [#allocation4], 0  ;;  %s803_s24 = smov [#allocation5]  }
   0x4   :  { %s31_s25 = sshll.u32 %s803_s24, 4  ;;  %s32_s25 = int_to_ptr.vmem [resolvable:$true] %s31_s25 }
   0x5   :  { %s703_s26 = scalar_lea.vmem %s32_s25, 2048  ;;  %p708_p1 = scmp.lt.s32.totalorder %s32_s25, %s32_s25 }
   0x6   :  { %p704_p0 = scmp.ne.s32.totalorder %s32_s25, %s703_s26  ;;  %p709_p2 = scmp.lt.s32.totalorder %s703_s26, %s703_s26 }
   0x8   :  { %p710_p3 = por %p709_p2, %p708_p1 }
   0xa   :  { %p711_p4 = pnand %p710_p3, %p704_p0 }
   0xc   :  { %714 = shalt.err (!%p711_p4)
}
   0xd   :  { %s804_s27 = smov 128   ;;  %s805_s28 = smov 8  }
   0xe   :  { %37 = dma.hbm_to_vmem [thread:$0]  %s961_s1, 2048, %s32_s25, [#allocation6], %s804_s27, %s804_s27, %s805_s28  }
   0xf   :  { %s806_s8 = smov [#allocation2]   ;;  %s807_s10 = smov [#allocation7]  }
  0x10   :  { %s22_s9 = sshll.u32 %s806_s8, 4  ;;  %s45_s11 = sshll.u32 %s807_s10, 4  ;;  %s23_s9 = int_to_ptr.vmem [resolvable:$true] %s22_s9  ;;  %s46_s11 = int_to_ptr.vmem [resolvable:$true] %s45_s11 }
  0x11   :  { %s723_s12 = scalar_lea.vmem %s23_s9, 128  ;;  %p728_p6 = scmp.lt.s32.totalorder %s23_s9, %s23_s9 }
  0x12   :  { %p724_p5 = scmp.ne.s32.totalorder %s23_s9, %s723_s12  ;;  %p729_p7 = scmp.lt.s32.totalorder %s723_s12, %s723_s12 }
  0x14   :  { %p730_p8 = por %p729_p7, %p728_p6 }
  0x16   :  { %p731_p9 = pnand %p730_p8, %p724_p5 }
  0x18   :  { %734 = shalt.err (!%p731_p9)
}
  0x19   :  { %25 = dma.hbm_to_vmem [thread:$0]  %s960_s0, 128, %s23_s9, [#allocation3]  }
  0x1a   :  { %s743_s15 = scalar_lea.vmem %s46_s11, 4096  ;;  %p748_p11 = scmp.lt.s32.totalorder %s46_s11, %s46_s11 }
  0x1b   :  { %p744_p10 = scmp.ne.s32.totalorder %s46_s11, %s743_s15  ;;  %p749_p12 = scmp.lt.s32.totalorder %s743_s15, %s743_s15 }
  0x1d   :  { %p750_p13 = por %p749_p12, %p748_p11 }
  0x1f   :  { %p751_p0 = pnand %p750_p13, %p744_p10 }
  0x21   :  { %754 = shalt.err (!%p751_p0)
}
  0x22   :  { %51 = dma.hbm_to_vmem [thread:$0]  %s963_s3, 4096, %s46_s11, [#allocation6], %s804_s27, %s804_s27, %s805_s28  }
  0x23   :  { %s808_s17 = smov [#allocation8]  }
  0x24   :  { %s59_s18 = sshll.u32 %s808_s17, 4  ;;  %s60_s18 = int_to_ptr.vmem [resolvable:$true] %s59_s18 }
  0x25   :  { %s763_s19 = scalar_lea.vmem %s60_s18, 2048  ;;  %p768_p2 = scmp.lt.s32.totalorder %s60_s18, %s60_s18 }
  0x26   :  { %p764_p1 = scmp.ne.s32.totalorder %s60_s18, %s763_s19  ;;  %p769_p3 = scmp.lt.s32.totalorder %s763_s19, %s763_s19 }
  0x28   :  { %p770_p4 = por %p769_p3, %p768_p2 }
  0x2a   :  { %p771_p5 = pnand %p770_p4, %p764_p1 }
  0x2c   :  { %774 = shalt.err (!%p771_p5)
}
  0x2d   :  { %65 = dma.hbm_to_vmem [thread:$0]  %s965_s5, 2048, %s60_s18, [#allocation9], %s804_s27, %s804_s27, %s805_s28  }
  0x2e   :  { %795 = dma.done.wait [#allocation3], 128  }
  0x2f   :  { %796 = vsyncadd [#allocation3], 4294967168 }
  0x30   :  { %797 = dma.done.wait [#allocation6], 6144  }
  0x31   :  { %798 = vsyncadd [#allocation6], 4294961152 }
  0x32   :  { %799 = dma.done.wait [#allocation9], 2048  }
  0x33   :  { %800 = vsyncadd [#allocation9], 4294965248  ;;  %v809_v0 = vmov 0.0   ;;  %vm810_vm0 = vmmov 0   ;;  %v96_v1 = vld [vmem:[#allocation5 + $0x78] sm:$0xff]  ;;  %v95_v2 = vld [vmem:[#allocation5 + $0x70] sm:$0xff] }
  0x34   :  { %546 = vmatprep.subr.mxu0 %v809_v0  ;;  %578 = vmatprep.mubr.msk.f32.mxu0 %vm810_vm0, %v809_v0  ;;  %v94_v3 = vld [vmem:[#allocation5 + $0x68] sm:$0xff]  ;;  %v93_v4 = vld [vmem:[#allocation5 + $0x60] sm:$0xff]  ;;  %v189_v5 = vld [vmem:[#allocation7 + $0x78] sm:$0xff]  ;;  %s811_s26 = smov [#allocation10]  }
  0x35   :  { %581 = vmatprep.subr.mxu1 %v809_v0  ;;  %613 = vmatprep.mubr.msk.f32.mxu1 %vm810_vm0, %v809_v0  ;;  %v92_v6 = vld [vmem:[#allocation5 + $0x58] sm:$0xff]  ;;  %v188_v7 = vld [vmem:[#allocation7 + $0x70] sm:$0xff]  ;;  %v187_v8 = vld [vmem:[#allocation7 + $0x68] sm:$0xff]  ;;  %s462_s27 = sshll.u32 %s811_s26, 4  ;;  %s463_s27 = int_to_ptr.vmem [resolvable:$true] %s462_s27 }
  0x36   :  { %547 = vmatpush3.msra.mxu0 %v96_v1  ;;  %582 = vmatpush3.msra.mxu1 %v189_v5  ;;  %v91_v9 = vld [vmem:[#allocation5 + $0x50] sm:$0xff]  ;;  %v186_v10 = vld [vmem:[#allocation7 + $0x60] sm:$0xff]  ;;  %v90_v11 = vld [vmem:[#allocation5 + $0x48] sm:$0xff]  ;;  %s775_s28 = scalar_lea.vmem %s463_s27, 128  ;;  %p780_p7 = scmp.lt.s32.totalorder %s463_s27, %s463_s27 }
  0x37   :  { %548 = vmatprep.subr.mxu0 %v809_v0  ;;  %583 = vmatprep.subr.mxu1 %v809_v0  ;;  %v185_v12 = vld [vmem:[#allocation7 + $0x58] sm:$0xff]  ;;  %v89_v13 = vld [vmem:[#allocation5 + $0x40] sm:$0xff]  ;;  %v184_v14 = vld [vmem:[#allocation7 + $0x50] sm:$0xff]  ;;  %p776_p6 = scmp.ne.s32.totalorder %s463_s27, %s775_s28  ;;  %p781_p8 = scmp.lt.s32.totalorder %s775_s28, %s775_s28 }
  0x38   :  { %549 = vmatpush3.msra.mxu0 %v95_v2  ;;  %584 = vmatpush3.msra.mxu1 %v188_v7  ;;  %v88_v15 = vld [vmem:[#allocation5 + $0x38] sm:$0xff]  ;;  %v183_v16 = vld [vmem:[#allocation7 + $0x48] sm:$0xff]  ;;  %v87_v17 = vld [vmem:[#allocation5 + $0x30] sm:$0xff] }
  0x39   :  { %550 = vmatprep.subr.mxu0 %v809_v0  ;;  %585 = vmatprep.subr.mxu1 %v809_v0  ;;  %v182_v18 = vld [vmem:[#allocation7 + $0x40] sm:$0xff]  ;;  %v86_v19 = vld [vmem:[#allocation5 + $0x28] sm:$0xff]  ;;  %v181_v20 = vld [vmem:[#allocation7 + $0x38] sm:$0xff]  ;;  %p782_p9 = por %p781_p8, %p780_p7 }
  0x3a   :  { %551 = vmatpush3.msra.mxu0 %v94_v3  ;;  %586 = vmatpush3.msra.mxu1 %v187_v8  ;;  %v85_v21 = vld [vmem:[#allocation5 + $0x20] sm:$0xff]  ;;  %v180_v22 = vld [vmem:[#allocation7 + $0x30] sm:$0xff]  ;;  %v84_v23 = vld [vmem:[#allocation5 + $0x18] sm:$0xff] }
  0x3b   :  { %552 = vmatprep.subr.mxu0 %v809_v0  ;;  %587 = vmatprep.subr.mxu1 %v809_v0  ;;  %v179_v24 = vld [vmem:[#allocation7 + $0x28] sm:$0xff]  ;;  %v83_v25 = vld [vmem:[#allocation5 + $0x10] sm:$0xff]  ;;  %v178_v26 = vld [vmem:[#allocation7 + $0x20] sm:$0xff]  ;;  %p783_p10 = pnand %p782_p9, %p776_p6 }
  0x3c   :  { %553 = vmatpush3.msra.mxu0 %v93_v4  ;;  %588 = vmatpush3.msra.mxu1 %v186_v10  ;;  %v82_v27 = vld [vmem:[#allocation5 + $0x8] sm:$0xff]  ;;  %v177_v28 = vld [vmem:[#allocation7 + $0x18] sm:$0xff]  ;;  %v81_v29 = vld [vmem:[#allocation5] sm:$0xff] }
  0x3d   :  { %554 = vmatprep.subr.mxu0 %v809_v0  ;;  %589 = vmatprep.subr.mxu1 %v809_v0  ;;  %v80_v30 = vld [vmem:[#allocation2] sm:$0xff]  ;;  %v176_v31 = vld [vmem:[#allocation7 + $0x10] sm:$0xff]  ;;  %v175_v32 = vld [vmem:[#allocation7 + $0x8] sm:$0xff] }
  0x3e   :  { %555 = vmatpush3.msra.mxu0 %v92_v6  ;;  %590 = vmatpush3.msra.mxu1 %v185_v12  ;;  %v174_v33 = vld [vmem:[#allocation7] sm:$0xff]  ;;  %v283_v34 = vld [vmem:[#allocation7 + $0xf8] sm:$0xff]  ;;  %v282_v35 = vld [vmem:[#allocation7 + $0xf0] sm:$0xff] }
  0x3f   :  { %556 = vmatprep.subr.mxu0 %v809_v0  ;;  %591 = vmatprep.subr.mxu1 %v809_v0  ;;  %v281_v36 = vld [vmem:[#allocation7 + $0xe8] sm:$0xff]  ;;  %v280_v37 = vld [vmem:[#allocation7 + $0xe0] sm:$0xff]  ;;  %v279_v38 = vld [vmem:[#allocation7 + $0xd8] sm:$0xff] }
  0x40   :  { %557 = vmatpush3.msra.mxu0 %v91_v9  ;;  %592 = vmatpush3.msra.mxu1 %v184_v14  ;;  %v278_v39 = vld [vmem:[#allocation7 + $0xd0] sm:$0xff]  ;;  %v277_v40 = vld [vmem:[#allocation7 + $0xc8] sm:$0xff]  ;;  %v276_v41 = vld [vmem:[#allocation7 + $0xc0] sm:$0xff] }
  0x41   :  { %558 = vmatprep.subr.mxu0 %v809_v0  ;;  %593 = vmatprep.subr.mxu1 %v809_v0  ;;  %v275_v42 = vld [vmem:[#allocation7 + $0xb8] sm:$0xff]  ;;  %v274_v43 = vld [vmem:[#allocation7 + $0xb0] sm:$0xff]  ;;  %v273_v44 = vld [vmem:[#allocation7 + $0xa8] sm:$0xff] }
  0x42   :  { %559 = vmatpush3.msra.mxu0 %v90_v11  ;;  %594 = vmatpush3.msra.mxu1 %v183_v16  ;;  %v272_v45 = vld [vmem:[#allocation7 + $0xa0] sm:$0xff]  ;;  %v271_v46 = vld [vmem:[#allocation7 + $0x98] sm:$0xff]  ;;  %v270_v47 = vld [vmem:[#allocation7 + $0x90] sm:$0xff] }
  0x43   :  { %560 = vmatprep.subr.mxu0 %v809_v0  ;;  %595 = vmatprep.subr.mxu1 %v809_v0  ;;  %v473_v48 = vld [vmem:[%s962_s2] ss:$0 sm:$0xff]  ;;  %v269_v52 = vld [vmem:[#allocation7 + $0x88] sm:$0xff]  ;;  %v268_v53 = vld [vmem:[#allocation7 + $0x80] sm:$0xff] }
  0x44   :  { %561 = vmatpush3.msra.mxu0 %v89_v13  ;;  %596 = vmatpush3.msra.mxu1 %v182_v18  ;;  %v377_v54 = vld [vmem:[#allocation8 + $0x78] sm:$0xff]  ;;  %v376_v55 = vld [vmem:[#allocation8 + $0x70] sm:$0xff]  ;;  %v375_v56 = vld [vmem:[#allocation8 + $0x68] sm:$0xff] }
  0x45   :  { %562 = vmatprep.subr.mxu0 %v809_v0  ;;  %597 = vmatprep.subr.mxu1 %v809_v0  ;;  %v374_v57 = vld [vmem:[#allocation8 + $0x60] sm:$0xff]  ;;  %v373_v58 = vld [vmem:[#allocation8 + $0x58] sm:$0xff]  ;;  %v372_v59 = vld [vmem:[#allocation8 + $0x50] sm:$0xff] }
  0x46   :  { %563 = vmatpush3.msra.mxu0 %v88_v15  ;;  %598 = vmatpush3.msra.mxu1 %v181_v20  ;;  %v371_v60 = vld [vmem:[#allocation8 + $0x48] sm:$0xff]  ;;  %v370_v61 = vld [vmem:[#allocation8 + $0x40] sm:$0xff]  ;;  %v369_v62 = vld [vmem:[#allocation8 + $0x38] sm:$0xff] }
  0x47   :  { %564 = vmatprep.subr.mxu0 %v809_v0  ;;  %599 = vmatprep.subr.mxu1 %v809_v0  ;;  %v368_v63 = vld [vmem:[#allocation8 + $0x30] sm:$0xff]  ;;  %v367_v1 = vld [vmem:[#allocation8 + $0x28] sm:$0xff]  ;;  %v366_v2 = vld [vmem:[#allocation8 + $0x20] sm:$0xff] }
  0x48   :  { %565 = vmatpush3.msra.mxu0 %v87_v17  ;;  %600 = vmatpush3.msra.mxu1 %v180_v22  ;;  %v365_v3 = vld [vmem:[#allocation8 + $0x18] sm:$0xff]  ;;  %v364_v4 = vld [vmem:[#allocation8 + $0x10] sm:$0xff]  ;;  %v363_v9 = vld [vmem:[#allocation8 + $0x8] sm:$0xff] }
  0x49   :  { %566 = vmatprep.subr.mxu0 %v809_v0  ;;  %601 = vmatprep.subr.mxu1 %v809_v0  ;;  %v474_v5 = vld [vmem:[%s964_s4] ss:$0 sm:$0xff]  ;;  %v362_v10 = vld [vmem:[#allocation8] sm:$0xff]  ;;  %v476_v11 = vld [vmem:[%s964_s4 + $0x1] ss:$0 sm:$0xff] }
  0x4a   :  { %567 = vmatpush3.msra.mxu0 %v86_v19  ;;  %602 = vmatpush3.msra.mxu1 %v179_v24  ;;  %v477_v15 = vld [vmem:[%s966_s6] ss:$0 sm:$0xff] }
  0x4b   :  { %568 = vmatprep.subr.mxu0 %v809_v0  ;;  %603 = vmatprep.subr.mxu1 %v809_v0 }
  0x4c   :  { %569 = vmatpush3.msra.mxu0 %v85_v21  ;;  %604 = vmatpush3.msra.mxu1 %v178_v26 }
  0x4d   :  { %570 = vmatprep.subr.mxu0 %v809_v0  ;;  %605 = vmatprep.subr.mxu1 %v809_v0 }
  0x4e   :  { %571 = vmatpush3.msra.mxu0 %v84_v23  ;;  %606 = vmatpush3.msra.mxu1 %v177_v28 }
  0x4f   :  { %572 = vmatprep.subr.mxu0 %v809_v0  ;;  %607 = vmatprep.subr.mxu1 %v809_v0 }
  0x50   :  { %573 = vmatpush3.msra.mxu0 %v83_v25  ;;  %608 = vmatpush3.msra.mxu1 %v176_v31 }
  0x51   :  { %574 = vmatprep.subr.mxu0 %v809_v0  ;;  %609 = vmatprep.subr.mxu1 %v809_v0 }
  0x52   :  { %575 = vmatpush3.msra.mxu0 %v82_v27  ;;  %610 = vmatpush3.msra.mxu1 %v175_v32 }
  0x53   :  { %576 = vmatprep.subr.mxu0 %v809_v0  ;;  %611 = vmatprep.subr.mxu1 %v809_v0 }
  0x54   :  { %577 = vmatpush3.msra.mxu0 %v81_v29  ;;  %612 = vmatpush3.msra.mxu1 %v174_v33 }
  0x55   :  { %579 = vmatmul.mubr.f32.vlgmr.msra.gmra.mxu0 %v80_v30  ;;  %616 = vmatprep.subr.mxu0 %v809_v0 }
  0x56   :  { %648 = vmatprep.mubr.msk.f32.mxu0 %vm810_vm0, %v809_v0  ;;  %651 = vmatprep.subr.mxu1 %v809_v0 }
  0x57   :  { %617 = vmatpush3.msra.mxu0 %v283_v34 }
  0x58   :  { %618 = vmatprep.subr.mxu0 %v809_v0 }
  0x59   :  { %619 = vmatpush3.msra.mxu0 %v282_v35 }
  0x5a   :  { %620 = vmatprep.subr.mxu0 %v809_v0 }
  0x5b   :  { %621 = vmatpush3.msra.mxu0 %v281_v36 }
  0x5c   :  { %622 = vmatprep.subr.mxu0 %v809_v0 }
  0x5d   :  { %623 = vmatpush3.msra.mxu0 %v280_v37 }
  0x5e   :  { %624 = vmatprep.subr.mxu0 %v809_v0 }
  0x5f   :  { %625 = vmatpush3.msra.mxu0 %v279_v38 }
  0x60   :  { %626 = vmatprep.subr.mxu0 %v809_v0 }
  0x61   :  { %627 = vmatpush3.msra.mxu0 %v278_v39 }
  0x62   :  { %628 = vmatprep.subr.mxu0 %v809_v0 }
  0x63   :  { %629 = vmatpush3.msra.mxu0 %v277_v40 }
  0x64   :  { %630 = vmatprep.subr.mxu0 %v809_v0 }
  0x65   :  { %631 = vmatpush3.msra.mxu0 %v276_v41 }
  0x66   :  { %632 = vmatprep.subr.mxu0 %v809_v0 }
  0x67   :  { %633 = vmatpush3.msra.mxu0 %v275_v42 }
  0x68   :  { %634 = vmatprep.subr.mxu0 %v809_v0 }
  0x69   :  { %635 = vmatpush3.msra.mxu0 %v274_v43 }
  0x6a   :  { %636 = vmatprep.subr.mxu0 %v809_v0 }
  0x6b   :  { %637 = vmatpush3.msra.mxu0 %v273_v44 }
  0x6c   :  { %638 = vmatprep.subr.mxu0 %v809_v0 }
  0x6d   :  { %639 = vmatpush3.msra.mxu0 %v272_v45 }
  0x6e   :  { %640 = vmatprep.subr.mxu0 %v809_v0 }
  0x6f   :  { %641 = vmatpush3.msra.mxu0 %v271_v46 }
  0x70   :  { %642 = vmatprep.subr.mxu0 %v809_v0 }
  0x71   :  { %643 = vmatpush3.msra.mxu0 %v270_v47 }
  0x72   :  { %644 = vmatprep.subr.mxu0 %v809_v0 }
  0x73   :  { %645 = vmatpush3.msra.mxu0 %v269_v52 }
  0x74   :  { %646 = vmatprep.subr.mxu0 %v809_v0 }
  0x75   :  { %647 = vmatpush3.msra.mxu0 %v268_v53 }
 0x115   :  { %v170_v49 = vpop.f32.mrf.mxu0 }
 0x116   :  { %v171_v50 = vadd.f32 %v473_v48, %v170_v49 }
 0x117   :  { %v580_v51 = vpop.f32.mrf.mxu0 }
 0x118   :  { %614 = vmatmul.mubr.f32.vlgmr.msra.gmra.mxu1 %v171_v50 }
 0x119   :  { %683 = vmatprep.mubr.msk.f32.mxu1 %vm810_vm0, %v809_v0  ;;  %652 = vmatpush3.msra.mxu1 %v377_v54 }
 0x11a   :  { %653 = vmatprep.subr.mxu1 %v809_v0 }
 0x11b   :  { %654 = vmatpush3.msra.mxu1 %v376_v55 }
 0x11c   :  { %655 = vmatprep.subr.mxu1 %v809_v0 }
 0x11d   :  { %656 = vmatpush3.msra.mxu1 %v375_v56 }
 0x11e   :  { %657 = vmatprep.subr.mxu1 %v809_v0 }
 0x11f   :  { %658 = vmatpush3.msra.mxu1 %v374_v57 }
 0x120   :  { %659 = vmatprep.subr.mxu1 %v809_v0 }
 0x121   :  { %660 = vmatpush3.msra.mxu1 %v373_v58 }
 0x122   :  { %661 = vmatprep.subr.mxu1 %v809_v0 }
 0x123   :  { %662 = vmatpush3.msra.mxu1 %v372_v59 }
 0x124   :  { %663 = vmatprep.subr.mxu1 %v809_v0 }
 0x125   :  { %664 = vmatpush3.msra.mxu1 %v371_v60 }
 0x126   :  { %665 = vmatprep.subr.mxu1 %v809_v0 }
 0x127   :  { %666 = vmatpush3.msra.mxu1 %v370_v61 }
 0x128   :  { %667 = vmatprep.subr.mxu1 %v809_v0 }
 0x129   :  { %668 = vmatpush3.msra.mxu1 %v369_v62 }
 0x12a   :  { %669 = vmatprep.subr.mxu1 %v809_v0 }
 0x12b   :  { %670 = vmatpush3.msra.mxu1 %v368_v63 }
 0x12c   :  { %671 = vmatprep.subr.mxu1 %v809_v0 }
 0x12d   :  { %672 = vmatpush3.msra.mxu1 %v367_v1 }
 0x12e   :  { %673 = vmatprep.subr.mxu1 %v809_v0 }
 0x12f   :  { %674 = vmatpush3.msra.mxu1 %v366_v2 }
 0x130   :  { %675 = vmatprep.subr.mxu1 %v809_v0 }
 0x131   :  { %676 = vmatpush3.msra.mxu1 %v365_v3 }
 0x132   :  { %677 = vmatprep.subr.mxu1 %v809_v0 }
 0x133   :  { %678 = vmatpush3.msra.mxu1 %v364_v4 }
 0x134   :  { %679 = vmatprep.subr.mxu1 %v809_v0 }
 0x135   :  { %680 = vmatpush3.msra.mxu1 %v363_v9 }
 0x136   :  { %681 = vmatprep.subr.mxu1 %v809_v0 }
 0x137   :  { %682 = vmatpush3.msra.mxu1 %v362_v10 }
 0x1d8   :  { %v263_v6 = vpop.f32.mrf.mxu1 }
 0x1d9   :  { %v264_v7 = vadd.f32 %v474_v5, %v263_v6 }
 0x1da   :  { %v615_v8 = vpop.f32.mrf.mxu1 }
 0x1db   :  { %649 = vmatmul.mubr.f32.vlgmr.msra.gmra.mxu0 %v264_v7 }
 0x29b   :  { %v358_v12 = vpop.f32.mrf.mxu0 }
 0x29c   :  { %v359_v13 = vadd.f32 %v476_v11, %v358_v12 }
 0x29d   :  { %v650_v14 = vpop.f32.mrf.mxu0 }
 0x29e   :  { %684 = vmatmul.mubr.f32.vlgmr.msra.gmra.mxu1 %v359_v13 }
 0x35e   :  { %v451_v16 = vpop.f32.mrf.mxu1 }
 0x35f   :  { %v452_v17 = vadd.f32 %v477_v15, %v451_v16 }
 0x360   :  { %v685_v0 = vpop.f32.mrf.mxu1 }
 0x361   :  { %455 = vst [vmem:[#allocation10] sm:$0xff] %v452_v17 }
 0x362   :  { %786 = shalt.err (!%p783_p10)
}
 0x363   :  { %465 = dma.vmem_to_hbm [thread:$0]  %s463_s27, 128, %s967_s7, [#allocation4]  }
 0x364   :  { %801 = dma.done.wait [#allocation4], 128  }
 0x365   :  { %802 = vsyncadd [#allocation4], 4294967168 }
 0x366   :  { %469 = vsyncpa [#allocation3], 1 }
 0x367   :  { %470 = vsyncpa [#allocation6], 1 }
 0x368   :  { %471 = vsyncpa [#allocation9], 1 }
 0x369   :  { %472 = vsyncpa [#allocation4], 1 }

</bundles_post_ra>
